<compile_context>
chip_gen: v6e
topology: v6e:2x2x1
jax: 0.10.0
libtpu: 0.0.40
codegen_flags: <defaults>
</compile_context>

<pallas_src>
import functools

import jax
import jax.numpy as jnp
from jax.experimental import pallas as pl
from jax.experimental.pallas import tpu as pltpu

LANE = 128
SUB = 8  # f32 sublane granularity


def _round_up(x, m):
    return (x + m - 1) // m * m


# ------------------------------- Pallas kernel -------------------------------
def _fused_mlp_kernel(x_ref, *refs, acts):
    """x_ref: [C0p, tm] f32 pixel tile (channels on sublanes, pixels on lanes).
    refs: w0, b0, w1, b1, ..., w_{L-1}, b_{L-1}, o_ref
          w_i: [Coutp_i, Cinp_i] f32 (zero-padded), b_i: [Coutp_i, 1] f32.
    """
    o_ref = refs[-1]
    h = x_ref[...]
    for i, act in enumerate(acts):
        w = refs[2 * i][...]
        b = refs[2 * i + 1][...]
        # channels-on-sublane layout: next = W @ h (contract over Cin sublanes)
        acc = jnp.dot(w, h, preferred_element_type=jnp.float32) + b
        if act == "relu":
            acc = jnp.maximum(acc, 0.0)
        elif act == "lrelu":
            acc = jnp.where(acc > 0, acc, 0.2 * acc)
        elif act == "tanh":
            acc = jnp.tanh(acc)
        # "none": passthrough
        h = acc
    # single cast+store epilogue (no extra staging writes)
    o_ref[...] = h.astype(o_ref.dtype)


# --------------------------------- wrapper -----------------------------------
def mlp_conv_forward(params, x, *, activ="relu", tm_target=2048):
    """params: list of (w, b) per layer, w: [Cout, Cin, 1, 1], b: [Cout]
    (PyTorch Conv2d layout). x: NCHW float32. Returns NCHW float32."""
    n, c0, hh, ww = x.shape
    hw = hh * ww
    n_layers = len(params)
    for wt, _ in params:
        assert wt.shape[2:] == (1, 1), "MLPConv uses 1x1 convs only"

    # Per-block activation: every block uses `activ`, the last block is 'none'
    # (exactly how MLPConv builds its Conv2dBlock stack).
    acts = tuple([activ] * (n_layers - 1) + ["none"])

    dims = [c0] + [p[0].shape[0] for p in params]
    dims_p = [_round_up(d, SUB) for d in dims]      # sublane-pad channels only
    c0p, coutp = dims_p[0], dims_p[-1]
    cout = dims[-1]

    # Pixel tile width (lane axis): big tiles amortize per-step overhead; keep
    # padding waste small and guarantee >=2 total grid steps (v7x has 2 TCs).
    tm = min(tm_target, _round_up(hw, LANE))
    while tm > LANE and (_round_up(hw, tm) - hw) * 8 > hw:
        tm = _round_up(tm // 2, LANE)
    while tm > LANE and n * (_round_up(hw, tm) // tm) < 2:
        tm = _round_up(tm // 2, LANE)
    hwp = _round_up(hw, tm)
    grid = (n, hwp // tm)
    n_steps = n * (hwp // tm)

    # NCHW -> [N, C, H*W] is a free reshape; pad channels to a sublane multiple
    # and pixels to the tile multiple. Keep f32 for accuracy (mem traffic of
    # the real channels is tiny either way).
    x3 = x.reshape(n, c0, hw)
    if c0p != c0 or hwp != hw:
        x3 = jnp.pad(x3, ((0, 0), (0, c0p - c0), (0, hwp - hw)))

    x_spec_kwargs = {}
    if n_steps >= 3:
        x_spec_kwargs["pipeline_mode"] = pl.Buffered(3)   # hide input DMA
    in_specs = [pl.BlockSpec((None, c0p, tm), lambda b, j: (b, 0, j),
                             **x_spec_kwargs)]

    operands = []
    flops = 0
    transcendentals = 0
    weight_bytes = 0
    for li, (wt, bias) in enumerate(params):
        co, ci = wt.shape[0], wt.shape[1]
        cip, cop = dims_p[li], dims_p[li + 1]
        w2 = wt.reshape(co, ci)                              # [Cout, Cin]
        w2 = jnp.pad(w2, ((0, cop - co), (0, cip - ci))).astype(jnp.float32)
        b2 = jnp.pad(bias, (0, cop - co)).reshape(cop, 1).astype(jnp.float32)
        operands += [w2, b2]
        in_specs += [
            pl.BlockSpec((cop, cip), lambda b, j: (0, 0)),   # resident weights
            pl.BlockSpec((cop, 1), lambda b, j: (0, 0)),     # resident bias
        ]
        flops += 2 * n * hwp * cip * cop
        if acts[li] == "tanh":
            transcendentals += n * hwp * cop
        weight_bytes += (w2.size + b2.size) * 4

    bytes_accessed = x3.size * 4 + weight_bytes + n * coutp * hwp * 4

    # VMEM footprint: buffered x/out tiles + resident weights + per-layer temps.
    vmem_need = (
        3 * c0p * tm * 4                 # input tile (up to triple-buffered)
        + 2 * coutp * tm * 4             # output tile (double-buffered)
        + 2 * weight_bytes               # weights/biases (+buffer slack)
        + sum(dims_p[i + 1] * tm * 4 for i in range(n_layers))  # activations
    )
    vmem_limit = int(min(max(2 * vmem_need, 32 << 20), 48 << 20))

    out = pl.pallas_call(
        functools.partial(_fused_mlp_kernel, acts=acts),
        grid=grid,
        in_specs=in_specs,
        out_specs=pl.BlockSpec((None, coutp, tm), lambda b, j: (b, 0, j)),
        out_shape=jax.ShapeDtypeStruct((n, coutp, hwp), jnp.float32),
        compiler_params=pltpu.CompilerParams(
            dimension_semantics=("parallel", "parallel"),
            vmem_limit_bytes=vmem_limit,
        ),
        cost_estimate=pl.CostEstimate(
            flops=flops, transcendentals=transcendentals,
            bytes_accessed=bytes_accessed),
    )(x3, *operands)

    if coutp != cout or hwp != hw:
        out = out[:, :cout, :hw]
    return out.reshape(n, cout, hh, ww)


# ----------------------------- pure-JAX reference ----------------------------
def _ref_forward(params, x, *, activ="relu"):
    n, c, hh, ww = x.shape
    h = x.reshape(n, c, hh * ww).astype(jnp.float32)
    for i, (wt, b) in enumerate(params):
        co, ci = wt.shape[0], wt.shape[1]
        h = jnp.einsum("oc,ncp->nop", wt.reshape(co, ci), h) + b.reshape(1, co, 1)
        if i < len(params) - 1:
            if activ == "relu":
                h = jnp.maximum(h, 0.0)
            elif activ == "lrelu":
                h = jnp.where(h > 0, h, 0.2 * h)
            elif activ == "tanh":
                h = jnp.tanh(h)
    return h.reshape(n, -1, hh, ww)


# ------------------------------------ main ------------------------------------
if __name__ == "__main__":
    # MLPConv(input_dim=4, output_dim=8, dim=32, n_blk=3, norm='none', activ='relu')
    input_dim, output_dim, dim, n_blk = 4, 8, 32, 3
    activ = "relu"

    key = jax.random.PRNGKey(0)
    kx, kp = jax.random.split(key)
    x = jax.random.normal(kx, (2, input_dim, 16, 16), jnp.float32)

    # Layer stack: input_dim->dim (act), (n_blk-2)x dim->dim (act), dim->output_dim (none)
    params = []
    cin = input_dim
    layer_outs = [dim] * (n_blk - 1) + [output_dim]
    for cout in layer_outs:
        kp, k1, k2 = jax.random.split(kp, 3)
        w = jax.random.normal(k1, (cout, cin, 1, 1), jnp.float32) * 0.1
        b = jax.random.normal(k2, (cout,), jnp.float32) * 0.1
        params.append((w, b))
        cin = cout

    out = mlp_conv_forward(params, x, activ=activ)
    out = jax.block_until_ready(out)

    ref = _ref_forward(params, x, activ=activ)
    assert out.shape == (2, output_dim, 16, 16), out.shape
    # f32 operands with f32 accumulation; tolerance covers default MXU precision.
    assert jnp.allclose(out, ref, atol=2e-2, rtol=2e-2), float(
        jnp.max(jnp.abs(out - ref)))

    print("KERNEL_OK")
</pallas_src>

<mosaic_0001>
module attributes {stable_mosaic.version = 11 : i64} {
  func.func @_fused_mlp_kernel(%arg0: i32, %arg1: i32, %arg2: memref<1x8x256xf32, #tpu.memory_space<vmem>>, %arg3: memref<32x8xf32, #tpu.memory_space<vmem>>, %arg4: memref<32x1xf32, #tpu.memory_space<vmem>>, %arg5: memref<32x32xf32, #tpu.memory_space<vmem>>, %arg6: memref<32x1xf32, #tpu.memory_space<vmem>>, %arg7: memref<8x32xf32, #tpu.memory_space<vmem>>, %arg8: memref<8x1xf32, #tpu.memory_space<vmem>>, %arg9: memref<1x8x256xf32, #tpu.memory_space<vmem>>) attributes {dimension_semantics = [#tpu.dimension_semantics<parallel>, #tpu.dimension_semantics<parallel>], iteration_bounds = array<i64: 2, 1>, scalar_prefetch = 0 : i64, scratch_operands = 0 : i64, tpu.core_type = #tpu.core_type<tc>, window_params = [{transform_indices = @transform_0, window_bounds = array<i64: 1, 8, 256>}, {pipeline_mode = #tpu.pipeline_mode<synchronous>, transform_indices = @transform_1, window_bounds = array<i64: 32, 8>}, {pipeline_mode = #tpu.pipeline_mode<synchronous>, transform_indices = @transform_2, window_bounds = array<i64: 32, 1>}, {pipeline_mode = #tpu.pipeline_mode<synchronous>, transform_indices = @transform_3, window_bounds = array<i64: 32, 32>}, {pipeline_mode = #tpu.pipeline_mode<synchronous>, transform_indices = @transform_4, window_bounds = array<i64: 32, 1>}, {pipeline_mode = #tpu.pipeline_mode<synchronous>, transform_indices = @transform_5, window_bounds = array<i64: 8, 32>}, {pipeline_mode = #tpu.pipeline_mode<synchronous>, transform_indices = @transform_6, window_bounds = array<i64: 8, 1>}, {transform_indices = @transform_7, window_bounds = array<i64: 1, 8, 256>}]} {
    %c0 = arith.constant 0 : index
    %c0_0 = arith.constant 0 : index
    %c0_1 = arith.constant 0 : index
    %0 = vector.load %arg2[%c0, %c0_0, %c0_1] : memref<1x8x256xf32, #tpu.memory_space<vmem>>, vector<1x8x256xf32>
    %1 = vector.shape_cast %0 : vector<1x8x256xf32> to vector<8x256xf32>
    %c0_2 = arith.constant 0 : index
    %c0_3 = arith.constant 0 : index
    %2 = vector.load %arg3[%c0_2, %c0_3] : memref<32x8xf32, #tpu.memory_space<vmem>>, vector<32x8xf32>
    %c0_4 = arith.constant 0 : index
    %c0_5 = arith.constant 0 : index
    %3 = vector.load %arg4[%c0_4, %c0_5] : memref<32x1xf32, #tpu.memory_space<vmem>>, vector<32x1xf32>
    %cst = arith.constant dense<0.000000e+00> : vector<32x256xf32>
    %4 = tpu.matmul %2, %1, %cst {dimension_numbers = #tpu.dot_dimension_numbers<[1], [0], [0], [1], [0, 0, 1, 1], [], []>} : vector<32x8xf32>, vector<8x256xf32>, vector<32x256xf32> -> vector<32x256xf32>
    %5 = vector.broadcast %3 : vector<32x1xf32> to vector<32x256xf32>
    %6 = arith.addf %4, %5 : vector<32x256xf32>
    %cst_6 = arith.constant 0.000000e+00 : f32
    %7 = vector.broadcast %cst_6 : f32 to vector<32x256xf32>
    %8 = arith.maximumf %6, %7 : vector<32x256xf32>
    %c0_7 = arith.constant 0 : index
    %c0_8 = arith.constant 0 : index
    %9 = vector.load %arg5[%c0_7, %c0_8] : memref<32x32xf32, #tpu.memory_space<vmem>>, vector<32x32xf32>
    %c0_9 = arith.constant 0 : index
    %c0_10 = arith.constant 0 : index
    %10 = vector.load %arg6[%c0_9, %c0_10] : memref<32x1xf32, #tpu.memory_space<vmem>>, vector<32x1xf32>
    %cst_11 = arith.constant dense<0.000000e+00> : vector<32x256xf32>
    %11 = tpu.matmul %9, %8, %cst_11 {dimension_numbers = #tpu.dot_dimension_numbers<[1], [0], [0], [1], [0, 0, 1, 1], [], []>} : vector<32x32xf32>, vector<32x256xf32>, vector<32x256xf32> -> vector<32x256xf32>
    %12 = vector.broadcast %10 : vector<32x1xf32> to vector<32x256xf32>
    %13 = arith.addf %11, %12 : vector<32x256xf32>
    %cst_12 = arith.constant 0.000000e+00 : f32
    %14 = vector.broadcast %cst_12 : f32 to vector<32x256xf32>
    %15 = arith.maximumf %13, %14 : vector<32x256xf32>
    %c0_13 = arith.constant 0 : index
    %c0_14 = arith.constant 0 : index
    %16 = vector.load %arg7[%c0_13, %c0_14] : memref<8x32xf32, #tpu.memory_space<vmem>>, vector<8x32xf32>
    %c0_15 = arith.constant 0 : index
    %c0_16 = arith.constant 0 : index
    %17 = vector.load %arg8[%c0_15, %c0_16] : memref<8x1xf32, #tpu.memory_space<vmem>>, vector<8x1xf32>
    %cst_17 = arith.constant dense<0.000000e+00> : vector<8x256xf32>
    %18 = tpu.matmul %16, %15, %cst_17 {dimension_numbers = #tpu.dot_dimension_numbers<[1], [0], [0], [1], [0, 0, 1, 1], [], []>} : vector<8x32xf32>, vector<32x256xf32>, vector<8x256xf32> -> vector<8x256xf32>
    %19 = vector.broadcast %17 : vector<8x1xf32> to vector<8x256xf32>
    %20 = arith.addf %18, %19 : vector<8x256xf32>
    %c0_18 = arith.constant 0 : index
    %c0_19 = arith.constant 0 : index
    %c0_20 = arith.constant 0 : index
    %21 = vector.load %arg9[%c0_18, %c0_19, %c0_20] : memref<1x8x256xf32, #tpu.memory_space<vmem>>, vector<1x8x256xf32>
    %22 = vector.shape_cast %21 : vector<1x8x256xf32> to vector<8x256xf32>
    %23 = vector.shape_cast %20 : vector<8x256xf32> to vector<1x8x256xf32>
    tpu.vector_store %arg9[%c0_18, %c0_19, %c0_20], %23 {strides = array<i32>} : memref<1x8x256xf32, #tpu.memory_space<vmem>>, vector<1x8x256xf32>,
    return
  }
  func.func @transform_0(%arg0: i32, %arg1: i32) -> (i32, i32, i32) {
    %c0_i32 = arith.constant 0 : i32
    %c0_i32_0 = arith.constant 0 : i32
    return %arg0, %c0_i32, %arg1 : i32, i32, i32
  }
  func.func @transform_1(%arg0: i32, %arg1: i32) -> (i32, i32) {
    %c0_i32 = arith.constant 0 : i32
    %c0_i32_0 = arith.constant 0 : i32
    %c0_i32_1 = arith.constant 0 : i32
    return %c0_i32, %c0_i32_0 : i32, i32
  }
  func.func @transform_2(%arg0: i32, %arg1: i32) -> (i32, i32) {
    %c0_i32 = arith.constant 0 : i32
    %c0_i32_0 = arith.constant 0 : i32
    %c0_i32_1 = arith.constant 0 : i32
    return %c0_i32, %c0_i32_0 : i32, i32
  }
  func.func @transform_3(%arg0: i32, %arg1: i32) -> (i32, i32) {
    %c0_i32 = arith.constant 0 : i32
    %c0_i32_0 = arith.constant 0 : i32
    %c0_i32_1 = arith.constant 0 : i32
    return %c0_i32, %c0_i32_0 : i32, i32
  }
  func.func @transform_4(%arg0: i32, %arg1: i32) -> (i32, i32) {
    %c0_i32 = arith.constant 0 : i32
    %c0_i32_0 = arith.constant 0 : i32
    %c0_i32_1 = arith.constant 0 : i32
    return %c0_i32, %c0_i32_0 : i32, i32
  }
  func.func @transform_5(%arg0: i32, %arg1: i32) -> (i32, i32) {
    %c0_i32 = arith.constant 0 : i32
    %c0_i32_0 = arith.constant 0 : i32
    %c0_i32_1 = arith.constant 0 : i32
    return %c0_i32, %c0_i32_0 : i32, i32
  }
  func.func @transform_6(%arg0: i32, %arg1: i32) -> (i32, i32) {
    %c0_i32 = arith.constant 0 : i32
    %c0_i32_0 = arith.constant 0 : i32
    %c0_i32_1 = arith.constant 0 : i32
    return %c0_i32, %c0_i32_0 : i32, i32
  }
  func.func @transform_7(%arg0: i32, %arg1: i32) -> (i32, i32, i32) {
    %c0_i32 = arith.constant 0 : i32
    %c0_i32_0 = arith.constant 0 : i32
    return %arg0, %c0_i32, %arg1 : i32, i32, i32
  }
}

</mosaic_0001>

<bundles_post_ra>
// kernel: tpu_custom_call.1
= control target key start
LH: loop header
LB: loop body
LE: loop exit
PB: predicated region body
PF: predicated region fallthrough
CT: control target
= control target key end

     0   :  { %12 = vsyncpa [#allocation3], 0  ;;  %s1137_s0 = inlined_call_operand.vmem [shape: f32[2,8,256], index: 0, kind: input, shape index: {}]   ;;  %s1138_s1 = inlined_call_operand.vmem [shape: f32[32,8], index: 1, kind: input, shape index: {}]   ;;  %s1139_s2 = inlined_call_operand.vmem [shape: f32[32,1], index: 2, kind: input, shape index: {}]   ;;  %s1140_s3 = inlined_call_operand.vmem [shape: f32[32,32], index: 3, kind: input, shape index: {}]   ;;  %s1141_s4 = inlined_call_operand.vmem [shape: f32[32,1], index: 4, kind: input, shape index: {}]   ;;  %s1142_s5 = inlined_call_operand.vmem [shape: f32[8,32], index: 5, kind: input, shape index: {}]   ;;  %s1143_s6 = inlined_call_operand.vmem [shape: f32[8,1], index: 6, kind: input, shape index: {}]   ;;  %s1144_s7 = inlined_call_operand.hbm [shape: f32[2,8,256], index: 7, kind: output, shape index: {}]  }
   0x1   :  { %14 = vsyncpa [#allocation3 + $0x1], 0  ;;  %s966_s24 = smov 0   ;;  %s968_s25 = smov 0  }
   0x2   :  { %s970_s26 = smov 0   ;;  %s972_s27 = smov 0  }
   0x3   :  { %s974_s28 = smov 0   ;;  %s976_s29 = smov 0  }
   0x4 LB: > { %s762_s30 = sadd.s32 4294967295, %s921_s29   ;;  %s763_s8 = sadd.s32 4294967294, %s921_s29   ;;  %s921_s29 = sphi %s976_s29, %s20_s29   ;;  %s917_s28 = sphi %s974_s28, %s1151_s28   ;;  %s913_s27 = sphi %s972_s27, %s1150_s27   ;;  %s909_s26 = sphi %s970_s26, %s1149_s26   ;;  %s905_s25 = sphi %s968_s25, %s1148_s25   ;;  %s901_s24 = sphi %s966_s24, %s1147_s24  }
   0x5   : > { %s32_s9 = sadd.s32 1, %s917_s28  ;;  %s195_s10 = sadd.s32 1, %s909_s26 }
   0x6   : > { %p34_p0 = scmp.ge.s32.totalorder %s32_s9, 2  ;;  %p205_p1 = scmp.ne.s32.totalorder %s909_s26, %s905_s25 }
   0x7   : > { %p206_p2 = scmp.eq.s32.totalorder %s762_s30, 1  ;;  %p211_p3 = scmp.ne.s32.totalorder %s905_s25, %s901_s24 }
   0x8   : > { %s1153_s9 = smov (%p34_p0, %s32_s9), 0  ;;  %p212_p5 = scmp.eq.s32.totalorder %s763_s8, 1 }
   0x9   : > { %p1006_p4 = por %p206_p2, %p205_p1  ;;  %s190_s12 = ssub.s32 %s917_s28, %s1153_s9 }
   0xa   : > { %p766_p6 = scmp.ge.s32.totalorder %s921_s29, 1  ;;  %p193_p7 = scmp.eq.s32.totalorder %s190_s12, 0 }
   0xb   : > { %p1013_p8 = por %p212_p5, %p211_p3  ;;  %p261_p9 = scmp.lt.s32.totalorder %s921_s29, 3 }
   0xc   : > { %s1019_s14 = scalar_select %p193_p7, %s909_s26, %s195_s10  }
   0xd   : > { %p262_p10 = pnand %p766_p6, %p261_p9 }
   0xe   : > { %p298_p11 = scmp.lt.s32.totalorder (!%p262_p10), %s913_s27, 1  ;;  %s294_s17 = sand.u32 (!%p262_p10), 1, %s905_s25  }
   0xf   : > { %265 = sbr.rel (%p262_p10) target bundleno = 676 (0x2a4), region = 48  ;;  %s767_s18 = sshll.u32 (!%p262_p10), %s294_s17, 4 }
  0x10   : > { %s925_s12 = smov (!%p262_p10), [#allocation2]  }
  0x14   : > { %v923_v0 = vmov 0.0   ;;  %v317_v1 = vld [vmem:[%s1139_s2 + $0x18] sm:$0xff]  ;;  %v315_v2 = vld [vmem:[%s1139_s2 + $0x8] sm:$0xff]  ;;  %s299_s19 = scalar_select %p298_p11, %s913_s27, 1  ;;  %v924_v3 = vmov 0   ;;  %v316_v4 = vld [vmem:[%s1139_s2 + $0x10] sm:$0xff] }
  0x15   : > { %415 = vmatprep.mubr.f32.mxu0 %v923_v0  ;;  %553 = vmatprep.mubr.f32.mxu1 %v923_v0  ;;  %v314_v5 = vld [vmem:[%s1139_s2] sm:$0xff]  ;;  %vm338_vm0 = vcmask 64512   ;;  %v455_v9 = vld [vmem:[%s1141_s4 + $0x18] sm:$0xff]  ;;  %v454_v10 = vld [vmem:[%s1141_s4 + $0x10] sm:$0xff]  ;;  %vm476_vm1 = vcmask 261120  }
  0x16   : > { %844 = vset.pattern.permute.xlu1 %v924_v3  ;;  %843 = vset.pattern.permute.xlu0 %v924_v3  ;;  %s784_s20 = sshll.u32 %s299_s19, 4  ;;  %v310_v8 = vld [vmem:[%s1138_s1] sm:$0xff]  ;;  %v311_v11 = vld [vmem:[%s1138_s1 + $0x8] sm:$0xff]  ;;  %v312_v14 = vld [vmem:[%s1138_s1 + $0x10] sm:$0xff]  ;;  %s785_s19 = sshll.u32 %s913_s27, 8 }
  0x17   : > { %335 = vperm.xlu0 %843, %v317_v1   ;;  %325 = vperm.xlu1 %844, %v315_v2   ;;  %s305_s8 = scalar_lea.vmem %s1137_s0, %s784_s20  ;;  %v453_v12 = vld [vmem:[%s1141_s4 + $0x8] sm:$0xff]  ;;  %v452_v13 = vld [vmem:[%s1141_s4] sm:$0xff]  ;;  %v313_v16 = vld [vmem:[%s1138_s1 + $0x18] sm:$0xff]  ;;  %s296_s20 = scalar_lea.vmem [#allocation2], %s767_s18 }
  0x18   : > { %v309_v6 = vld [vmem:[%s305_s8 + $0x8] sm:$0xff]  ;;  %v308_v7 = vld [vmem:[%s305_s8] sm:$0xff]  ;;  %v450_v47 = vld [vmem:[%s1140_s3 + $0x10] sm:$0xff]  ;;  %s686_s21 = sshll.u32 %s296_s20, 4  ;;  %s684_s30 = scalar_lea.hbm %s1144_s7, %s785_s19  ;;  %s687_s21 = int_to_ptr.vmem [resolvable:$true] %s686_s21 }
  0x19   : > { %381 = vmatprep.subr.mxu0 %v309_v6  ;;  %v587_v15 = vld [vmem:[%s1143_s6] sm:$0xff]  ;;  %v449_v46 = vld [vmem:[%s1140_s3 + $0x8] sm:$0xff]  ;;  %v451_v48 = vld [vmem:[%s1140_s3 + $0x18] sm:$0xff]  ;;  %s670_s8 = scalar_lea.sflag [#allocation3], %s294_s17  ;;  %s845_s10 = scalar_lea.vmem %s687_s21, 256 }
  0x1a   : > { %382 = vmatpush1.msra.mxu0 %v308_v7  ;;  %v448_v45 = vld [vmem:[%s1140_s3] sm:$0xff]  ;;  %p846_p12 = scmp.ne.s32.totalorder %s687_s21, %s845_s10  ;;  %s849_s27 = sshll.u32 %s925_s12, 4  ;;  %s850_s27 = int_to_ptr.vmem [resolvable:$false] %s849_s27 }
  0x1b   : > { %330 = vperm.xlu0 %843, %v316_v4   ;;  %320 = vperm.xlu1 %844, %v314_v5   ;;  %s851_s15 = scalar_lea.vmem %s850_s27, 512  ;;  %p852_p1 = scmp.lt.s32.totalorder %s687_s21, %s850_s27 }
  0x1c   : > { %770 = vmatmul.mubr.msk.f32.vlgmr.msra.gmra.mxu0 %vm338_vm0, %v310_v8  ;;  %p847_p13 = pnand %p846_p12, %p1006_p4  ;;  %p853_p2 = scmp.lt.s32.totalorder %s851_s15, %s845_s10 }
  0x1d   : > { %421 = vmatprep.mubr.f32.mxu0 %v923_v0 }
  0x1e   : > { %p848_p0 = pneg %p847_p13  ;;  %p854_p3 = por %p853_p2, %p852_p1 }
  0x1f   : > { %473 = vperm.xlu0 %843, %v455_v9   ;;  %468 = vperm.xlu1 %844, %v454_v10  }
  0x20   : > { %771 = vmatmul.mubr.msk.f32.gmra.mxu0 %vm338_vm0, %v311_v11  ;;  %p855_p5 = pnand %p854_p3, %p848_p0 }
  0x21   : > { %427 = vmatprep.mubr.f32.mxu0 %v923_v0 }
  0x23   : > { %463 = vperm.xlu0 %843, %v453_v12   ;;  %458 = vperm.xlu1 %844, %v452_v13   ;;  %v586_v13 = vld [vmem:[%s1142_s5] sm:$0xff] }
  0x24   : > { %772 = vmatmul.mubr.msk.f32.gmra.mxu0 %vm338_vm0, %v312_v14 }
  0x25   : > { %433 = vmatprep.mubr.f32.mxu0 %v923_v0 }
  0x27   : > { %590 = vperm.xlu0 %843, %v587_v15  }
  0x28   : > { %773 = vmatmul.mubr.msk.f32.gmra.mxu0 %vm338_vm0, %v313_v16 }
  0x29   : > { %660 = vmatprep.mubr.f32.mxu0 %v923_v0 }
  0x92   : > { %v336_v21 = vpop.permute.xlu0 %335  ;;  %v326_v24 = vpop.permute.xlu1 %325 }
  0x96   : > { %v331_v26 = vpop.permute.xlu0 %330  ;;  %v321_v32 = vpop.permute.xlu1 %320 }
  0x9a   : > { %v474_v54 = vpop.permute.xlu0 %473  ;;  %v469_v56 = vpop.permute.xlu1 %468 }
  0x9e   : > { %v464_v62 = vpop.permute.xlu0 %463  ;;  %v459_v2 = vpop.permute.xlu1 %458 }
  0xa2   : > { %v591_v14 = vpop.permute.xlu0 %590 }
  0xdc   : > { %v417_v17 = vpop.f32.mrf.mxu0 }
  0xdd   : > { %v418_v39 = vadd.f32 %v417_v17, %v321_v32 }
  0xde   : > { %v419_v18 = vpop.f32.mrf.mxu0 }
  0xdf   : > { %v420_v37 = vadd.f32 %v419_v18, %v321_v32  ;;  %v440_v44 = vmax.f32 %v418_v39, 0.0 }
  0xe0   : > { %v423_v19 = vpop.f32.mrf.mxu0 }
  0xe1   : > { %v424_v35 = vadd.f32 %v423_v19, %v326_v24  ;;  %v441_v43 = vmax.f32 %v420_v37, 0.0 }
  0xe2   : > { %v425_v20 = vpop.f32.mrf.mxu0 }
  0xe3   : > { %v426_v33 = vadd.f32 %v425_v20, %v326_v24  ;;  %v442_v42 = vmax.f32 %v424_v35, 0.0 }
  0xe4   : > { %v429_v22 = vpop.f32.mrf.mxu0 }
  0xe5   : > { %v430_v31 = vadd.f32 %v429_v22, %v331_v26  ;;  %v443_v41 = vmax.f32 %v426_v33, 0.0 }
  0xe6   : > { %v431_v23 = vpop.f32.mrf.mxu0 }
  0xe7   : > { %v432_v29 = vadd.f32 %v431_v23, %v331_v26  ;;  %v444_v40 = vmax.f32 %v430_v31, 0.0 }
  0xe8   : > { %v435_v25 = vpop.f32.mrf.mxu0 }
  0xe9   : > { %v436_v27 = vadd.f32 %v435_v25, %v336_v21  ;;  %v445_v38 = vmax.f32 %v432_v29, 0.0 }
  0xea   : > { %v437_v28 = vpop.f32.mrf.mxu0 }
  0xeb   : > { %v438_v30 = vadd.f32 %v437_v28, %v336_v21  ;;  %v446_v36 = vmax.f32 %v436_v27, 0.0 }
  0xed   : > { %v447_v34 = vmax.f32 %v438_v30, 0.0 }
  0xef   : > { %513 = vmatprep.subr.mxu1 %v447_v34 }
  0xf0   : > { %514 = vmatpush1.msra.mxu1 %v446_v36 }
  0xf1   : > { %515 = vmatprep.subr.mxu1 %v445_v38 }
  0xf2   : > { %516 = vmatpush1.msra.mxu1 %v444_v40 }
  0xf3   : > { %517 = vmatprep.subr.mxu1 %v443_v41 }
  0xf4   : > { %518 = vmatpush1.msra.mxu1 %v442_v42 }
  0xf5   : > { %519 = vmatprep.subr.mxu1 %v441_v43 }
  0xf6   : > { %520 = vmatpush1.msra.mxu1 %v440_v44 }
  0xf7   : > { %774 = vmatmul.mubr.msk.f32.vlgmr.msra.gmra.mxu1 %vm476_vm1, %v448_v45 }
  0xf8   : > { %559 = vmatprep.mubr.f32.mxu1 %v923_v0 }
  0xfb   : > { %775 = vmatmul.mubr.msk.f32.gmra.mxu1 %vm476_vm1, %v449_v46 }
  0xfc   : > { %565 = vmatprep.mubr.f32.mxu1 %v923_v0 }
  0xff   : > { %776 = vmatmul.mubr.msk.f32.gmra.mxu1 %vm476_vm1, %v450_v47 }
 0x100   : > { %571 = vmatprep.mubr.f32.mxu1 %v923_v0 }
 0x103   : > { %777 = vmatmul.mubr.msk.f32.gmra.mxu1 %vm476_vm1, %v451_v48 }
 0x1b7   : > { %v555_v49 = vpop.f32.mrf.mxu1 }
 0x1b8   : > { %v556_v7 = vadd.f32 %v555_v49, %v459_v2 }
 0x1b9   : > { %v557_v50 = vpop.f32.mrf.mxu1 }
 0x1ba   : > { %v558_v5 = vadd.f32 %v557_v50, %v459_v2  ;;  %v578_v12 = vmax.f32 %v556_v7, 0.0 }
 0x1bb   : > { %v561_v51 = vpop.f32.mrf.mxu1 }
 0x1bc   : > { %v562_v3 = vadd.f32 %v561_v51, %v464_v62  ;;  %v579_v11 = vmax.f32 %v558_v5, 0.0 }
 0x1bd   : > { %v563_v52 = vpop.f32.mrf.mxu1 }
 0x1be   : > { %v564_v0 = vadd.f32 %v563_v52, %v464_v62  ;;  %v580_v10 = vmax.f32 %v562_v3, 0.0 }
 0x1bf   : > { %v567_v53 = vpop.f32.mrf.mxu1 }
 0x1c0   : > { %v568_v63 = vadd.f32 %v567_v53, %v469_v56  ;;  %v581_v9 = vmax.f32 %v564_v0, 0.0 }
 0x1c1   : > { %v569_v55 = vpop.f32.mrf.mxu1 }
 0x1c2   : > { %v570_v60 = vadd.f32 %v569_v55, %v469_v56  ;;  %v582_v8 = vmax.f32 %v568_v63, 0.0 }
 0x1c3   : > { %v573_v57 = vpop.f32.mrf.mxu1 }
 0x1c4   : > { %v574_v58 = vadd.f32 %v573_v57, %v474_v54  ;;  %v583_v6 = vmax.f32 %v570_v60, 0.0 }
 0x1c5   : > { %v575_v59 = vpop.f32.mrf.mxu1 }
 0x1c6   : > { %v576_v61 = vadd.f32 %v575_v59, %v474_v54  ;;  %v584_v4 = vmax.f32 %v574_v58, 0.0 }
 0x1c8   : > { %v585_v1 = vmax.f32 %v576_v61, 0.0 }
 0x1ca   : > { %620 = vmatprep.subr.mxu0 %v585_v1 }
 0x1cb   : > { %621 = vmatpush1.msra.mxu0 %v584_v4 }
 0x1cc   : > { %622 = vmatprep.subr.mxu0 %v583_v6 }
 0x1cd   : > { %623 = vmatpush1.msra.mxu0 %v582_v8 }
 0x1ce   : > { %624 = vmatprep.subr.mxu0 %v581_v9 }
 0x1cf   : > { %625 = vmatpush1.msra.mxu0 %v580_v10 }
 0x1d0   : > { %626 = vmatprep.subr.mxu0 %v579_v11 }
 0x1d1   : > { %627 = vmatpush1.msra.mxu0 %v578_v12 }
 0x1d2   : > { %778 = vmatmul.mubr.msk.f32.vlgmr.msra.gmra.mxu0 %vm476_vm1, %v586_v13 }
 0x292   : > { %v662_v15 = vpop.f32.mrf.mxu0 }
 0x293   : > { %v663_v16 = vadd.f32 %v662_v15, %v591_v14 }
 0x294   : > { %v664_v17 = vpop.f32.mrf.mxu0 }
 0x295   : > { %667 = vst [vmem:[%s296_s20] sm:$0xff] %v663_v16  ;;  %v665_v18 = vadd.f32 %v664_v17, %v591_v14 }
 0x297   : > { %668 = vst [vmem:[%s296_s20 + $0x8] sm:$0xff] %v665_v18 }
 0x298   : > { %858 = shalt.err (!%p855_p5)
}
 0x299   : > { %s859_s16 = scalar_lea.hbm %s684_s30, 256  ;;  %s863_s19 = scalar_lea.hbm %s1144_s7, 512 }
 0x29a   : > { %p860_p6 = scmp.ne.s32.totalorder %s684_s30, %s859_s16  ;;  %p864_p10 = scmp.lt.s32.totalorder %s684_s30, %s1144_s7 }
 0x29b   : > { %p865_p11 = scmp.lt.s32.totalorder %s863_s19, %s859_s16 }
 0x29c   : > { %p861_p7 = pnand %p860_p6, %p1006_p4 }
 0x29d   : > { %p866_p12 = por %p865_p11, %p864_p10 }
 0x29e   : > { %p862_p9 = pneg %p861_p7 }
 0x2a0   : > { %p867_p13 = pnand %p866_p12, %p862_p9 }
 0x2a2   : > { %870 = shalt.err (!%p867_p13)
}
 0x2a3   : > { %786 = dma.vmem_to_hbm [thread:$0]  (%p1006_p4), %s687_s21, 256, %s684_s30, %s670_s8  }
 0x2a4 PF: > { %p792_p0 = scmp.ge.s32.totalorder %s921_s29, 2  ;;  %s698_s23 = sand.u32 1, %s901_s24  }
 0x2a5   : > { %s699_s10 = scalar_lea.sflag [#allocation3], %s698_s23 }
 0x2a6   : > { %p789_p1 = pnand %p792_p0, %p1013_p8 }
 0x2a8   : > { %p790_p2 = pneg %p789_p1 }
 0x2aa   : > { %896 = dma.done.wait (%p790_p2), %s699_s10, 256  }
 0x2ab   : > { %898 = vsyncadd (%p790_p2), %s699_s10, 4294967040  ;;  %s20_s29 = sadd.s32 1, %s921_s29   ;;  %s1147_s24 = smov %s905_s25 }
 0x2ac   : > { %p17_p3 = scmp.ge.s32.totalorder %s20_s29, 4   ;;  %s1148_s25 = smov %s909_s26 }
 0x2ad   : > { %s1149_s26 = smov %s1019_s14  ;;  %s1150_s27 = smov %s917_s28 }
 0x2ae   : > { %s1151_s28 = smov %s1153_s9  ;;  %19 = sbr.rel (!%p17_p3) target bundleno = 4 (0x4), region = 83 }
 0x2b3   :  { %704 = vsyncpa [#allocation3], 1 }
 0x2b4   :  { %706 = vsyncpa [#allocation3 + $0x1], 1 }

</bundles_post_ra>
